<compile_context>
chip_gen: v7x
topology: tpu7x:2x2x1
jax: 0.10.0
libtpu: 0.0.40
codegen_flags: <defaults>
</compile_context>

<pallas_src>
import functools

import numpy as np
import jax
import jax.numpy as jnp
from jax.experimental import pallas as pl
from jax.experimental.pallas import tpu as pltpu

_LANE = 128          # TPU lane width: feature tiles are multiples of this
_SUBLANE_BF16 = 16   # sublane multiple for bf16-packed tiles (covers f32's 8 too)


def _round_up(x, m):
    return (x + m - 1) // m * m


def _num_tensorcores():
    """Best-effort TensorCores-per-chip query (v7x has 2).  Performance-only."""
    try:
        info = pltpu.get_tpu_info()
        for name in ("num_tensorcores", "tensorcores_per_chip",
                     "cores_per_chip", "num_cores"):
            v = getattr(info, name, None)
            if isinstance(v, int) and v > 0:
                return v
    except Exception:
        pass
    try:
        kind = jax.devices()[0].device_kind.lower()
        if "v7" in kind or "7x" in kind:
            return 2
    except Exception:
        pass
    return 1


def _pick_feature_tile(f_pad, n_pad, out_rows, x_bytes, o_bytes, n_cores, cap):
    """Largest lane-dense feature tile that fits a ~36 MiB working set.

    Fewest, largest tiles on single-TC chips (every extra grid step is pure
    per-step overhead for a mem-bound kernel); >= n_cores balanced tiles on
    multi-TC chips (v7x) so the "parallel" grid axis actually engages both.
    """
    budget = 36 << 20                                           # per-core VMEM budget
    per_lane = 2 * (n_pad * x_bytes + out_rows * o_bytes)       # double-buffered X + OUT
    max_tf = max(_LANE, (budget // per_lane) // _LANE * _LANE)
    if cap is not None:
        max_tf = min(max_tf, max(_LANE, _round_up(int(cap), _LANE)))
    steps = max(n_cores, -(-f_pad // max_tf))
    tf = _round_up(-(-f_pad // steps), _LANE)
    return min(tf, _round_up(f_pad, _LANE))


def _multiscale_grid_kernel(w_ref, m_ref, x_ref, out_ref, *,
                            num_scales, out_rows, compute_dtype):
    # w_ref:   SMEM (S,)          trainable scale weights (f32 scalars)
    # m_ref:   VMEM (S, Np, Np)   per-scale 0/1 connectivity*presence masks, resident
    # x_ref:   VMEM (Np, TF)      one lane-dense feature tile of stacked node spikes
    # out_ref: VMEM (Nout, TF)    matching output tile (Nout = round_up(n, 8) <= Np)
    #
    # Combining the masks here is a handful of VPU FMAs on a tiny (Np, Np) tile;
    # it is free under the DMA and removes the wrapper einsum + C round-trip.
    c = w_ref[0] * m_ref[0]
    for s in range(1, num_scales):
        c = c + w_ref[s] * m_ref[s]
    acc = jnp.dot(c.astype(compute_dtype), x_ref[...],
                  preferred_element_type=jnp.float32)
    # Only store the non-padded (f32-sublane-aligned) output rows.
    out_ref[...] = acc[:out_rows, :].astype(out_ref.dtype)


@functools.lru_cache(maxsize=64)
def _connectivity_masks(node_list, present, spacings, n_pad):
    """Static per-scale 0/1 masks, built once per (node_list, present-set, spacings)."""
    n = len(node_list)
    idx = np.arange(n)
    pset = set(present)
    pmask = np.array([1.0 if nm in pset else 0.0 for nm in node_list], np.float32)
    masks = np.zeros((len(spacings), n_pad, n_pad), np.float32)
    for s, sp in enumerate(spacings):
        hit = (np.abs(idx[:, None] - idx[None, :]) == sp).astype(np.float32)
        masks[s, :n, :n] = hit * pmask[:, None] * pmask[None, :]   # [dst, src]
    return jnp.asarray(masks)   # cached on device across calls


@functools.partial(
    jax.jit,
    static_argnames=("node_list", "n_pad", "f_pad", "tf", "out_rows", "compute_dtype"),
)
def _multi_scale_grid_fwd(node_spikes, scale_w, masks, *, node_list, n_pad,
                          f_pad, tf, out_rows, compute_dtype):
    present = tuple(nm for nm in node_list if nm in node_spikes)
    ref = node_spikes[present[0]]
    orig_shape, out_dtype = ref.shape, ref.dtype
    n = len(node_list)
    feat = int(np.prod(orig_shape))
    num_scales = int(masks.shape[0])

    # Stack nodes -> [N, F]; absent nodes contribute zero rows (also masked in C).
    # TODO(synk): callers that keep spikes pre-stacked as one [N, F] array would
    #             skip this per-call stack/pad glue and the per-node output slicing.
    rows = [node_spikes[nm].reshape(-1).astype(compute_dtype)
            if nm in node_spikes else jnp.zeros((feat,), compute_dtype)
            for nm in node_list]
    x = jnp.pad(jnp.stack(rows, axis=0), ((0, n_pad - n), (0, f_pad - feat)))

    x_bytes = jnp.dtype(compute_dtype).itemsize
    o_bytes = jnp.dtype(out_dtype).itemsize
    vmem_need = (2 * n_pad * tf * x_bytes
                 + 2 * out_rows * tf * o_bytes
                 + 2 * num_scales * n_pad * n_pad * 4)
    # >= 16 MiB so v5e's small scoped default never caps us; <= 48 MiB for v7x.
    vmem_limit = int(min(48 << 20, max(16 << 20, vmem_need + (4 << 20))))

    kernel = functools.partial(_multiscale_grid_kernel, num_scales=num_scales,
                               out_rows=out_rows, compute_dtype=compute_dtype)

    out = pl.pallas_call(
        kernel,
        out_shape=jax.ShapeDtypeStruct((out_rows, f_pad), out_dtype),
        grid=(f_pad // tf,),
        in_specs=[
            pl.BlockSpec(memory_space=pltpu.MemorySpace.SMEM),               # scale weights
            pl.BlockSpec((num_scales, n_pad, n_pad), lambda j: (0, 0, 0)),   # masks: resident
            pl.BlockSpec((n_pad, tf), lambda j: (0, j)),                     # X feature tile
        ],
        out_specs=pl.BlockSpec((out_rows, tf), lambda j: (0, j)),
        compiler_params=pltpu.CompilerParams(
            dimension_semantics=("parallel",),   # F tiles shard across TCs (v7x)
            vmem_limit_bytes=vmem_limit,
        ),
    )(scale_w, masks, x)

    return {nm: out[i, :feat].reshape(orig_shape)
            for i, nm in enumerate(node_list) if nm in node_spikes}


def multi_scale_grid(node_spikes, node_list, scale_weights, spacings=(2, 3, 5),
                     compute_dtype=jnp.bfloat16, max_feature_tile=None):
    """JAX/Pallas equivalent of MultiScaleGrid.forward (forward pass only)."""
    # TODO(synk): training path needs a jax.custom_vjp around the pallas_call
    #             (dX = C^T @ g, dw_s = sum(mask_s * (g @ X^T))); forward only here.
    # NOTE: bf16 compute is exact only because spikes are binary 0/1; pass
    #       compute_dtype=jnp.float32 for graded spike values / trained weights.
    node_list = tuple(node_list)
    spacings = tuple(int(s) for s in spacings)
    present = tuple(nm for nm in node_list if nm in node_spikes)
    if not present:
        return {}

    ref = node_spikes[present[0]]
    feat = int(np.prod(ref.shape))
    out_dtype = jnp.dtype(ref.dtype)
    n = len(node_list)

    x_bytes = jnp.dtype(compute_dtype).itemsize
    o_bytes = out_dtype.itemsize

    # X/C rows padded to the bf16 sublane multiple (16); output rows padded only
    # to the output dtype's own sublane multiple (8 for f32) -> no padded-row writeback.
    n_pad = _round_up(max(n, _SUBLANE_BF16), _SUBLANE_BF16)
    out_sublane = {4: 8, 2: 16, 1: 32}.get(o_bytes, 8)
    out_rows = _round_up(max(n, out_sublane), out_sublane)
    n_pad = _round_up(max(n_pad, out_rows), _SUBLANE_BF16)

    f_pad = _round_up(max(feat, _LANE), _LANE)
    tf = _pick_feature_tile(f_pad, n_pad, out_rows, x_bytes, o_bytes,
                            _num_tensorcores(), max_feature_tile)
    f_pad = _round_up(f_pad, tf)          # ensure tf | f_pad

    masks = _connectivity_masks(node_list, present, spacings, n_pad)
    scale_w = jnp.asarray(scale_weights, dtype=jnp.float32)

    return _multi_scale_grid_fwd(
        node_spikes, scale_w, masks,
        node_list=node_list, n_pad=n_pad, f_pad=f_pad, tf=tf,
        out_rows=out_rows, compute_dtype=compute_dtype,
    )


if __name__ == "__main__":
    # Deterministic setup mirroring the module's __init__ defaults.
    node_list = [f"node_{i}" for i in range(8)]
    spacings = (2, 3, 5)             # fine, medium, coarse
    scale_weights = (0.5, 0.3, 0.2)  # nn.Parameter initial values

    key = jax.random.PRNGKey(0)

    def make_spikes(key, shape):
        spikes = {}
        for nm in node_list:
            key, sub = jax.random.split(key)
            spikes[nm] = (jax.random.uniform(sub, shape) > 0.5).astype(jnp.float32)
        return key, spikes

    def reference(spikes, shape):
        # Pure-numpy reference reproducing the PyTorch double loop exactly (f32 weights).
        out = {nm: np.zeros(shape, np.float32) for nm in node_list if nm in spikes}
        sp_np = {nm: np.asarray(v) for nm, v in spikes.items()}
        for s, spc in enumerate(spacings):
            wgt = scale_weights[s]
            for i in range(len(node_list)):
                for j in range(len(node_list)):
                    if abs(i - j) != spc:
                        continue
                    src, dst = node_list[i], node_list[j]
                    if src in spikes and dst in out:
                        out[dst] += sp_np[src] * wgt
        return out

    # bf16 C entries round the weights by <= ~2e-4 each (spikes are 0/1 -> exact),
    # accumulation is f32, so tolerances below are comfortable.
    RTOL, ATOL = 1e-2, 5e-3

    # Case 1: all nodes present, small feature dim (single-tile path).
    B, H = 2, 64
    key, spikes = make_spikes(key, (B, H))
    out = jax.block_until_ready(
        multi_scale_grid(spikes, node_list, scale_weights, spacings))
    ref = reference(spikes, (B, H))
    assert set(out.keys()) == set(ref.keys())
    for nm in ref:
        np.testing.assert_allclose(np.asarray(out[nm]), ref[nm], rtol=RTOL, atol=ATOL)

    # Case 2: one node missing (exercises presence mask + cached-mask path).
    partial = {nm: v for nm, v in spikes.items() if nm != "node_3"}
    out_p = jax.block_until_ready(
        multi_scale_grid(partial, node_list, scale_weights, spacings))
    ref_p = reference(partial, (B, H))
    assert set(out_p.keys()) == set(ref_p.keys())
    for nm in ref_p:
        np.testing.assert_allclose(np.asarray(out_p[nm]), ref_p[nm], rtol=RTOL, atol=ATOL)

    # Case 3: larger feature dim with a forced multi-tile grid (multi-step / v7x path).
    B2, H2 = 2, 1024
    key, spikes_big = make_spikes(key, (B2, H2))
    out_b = jax.block_until_ready(
        multi_scale_grid(spikes_big, node_list, scale_weights, spacings,
                         max_feature_tile=1024))
    ref_b = reference(spikes_big, (B2, H2))
    assert set(out_b.keys()) == set(ref_b.keys())
    for nm in ref_b:
        np.testing.assert_allclose(np.asarray(out_b[nm]), ref_b[nm], rtol=RTOL, atol=ATOL)

    # Case 4: empty input -> empty output (no IndexError).
    assert multi_scale_grid({}, node_list, scale_weights, spacings) == {}

    print("KERNEL_OK")
</pallas_src>

<mosaic_0001>
module attributes {stable_mosaic.version = 11 : i64} {
  func.func @_multiscale_grid_kernel(%arg0: i32, %arg1: memref<3xf32, #tpu.memory_space<smem>>, %arg2: memref<3x16x16xf32, #tpu.memory_space<vmem>>, %arg3: memref<16x128xbf16, #tpu.memory_space<vmem>>, %arg4: memref<8x128xf32, #tpu.memory_space<vmem>>) attributes {dimension_semantics = [#tpu.dimension_semantics<parallel>], iteration_bounds = array<i64: 1>, scalar_prefetch = 0 : i64, scratch_operands = 0 : i64, tpu.core_type = #tpu.core_type<tc>, window_params = [{transform_indices = @transform_0, window_bounds = array<i64: 3>}, {pipeline_mode = #tpu.pipeline_mode<synchronous>, transform_indices = @transform_1, window_bounds = array<i64: 3, 16, 16>}, {transform_indices = @transform_2, window_bounds = array<i64: 16, 128>}, {transform_indices = @transform_3, window_bounds = array<i64: 8, 128>}]} {
    %c0 = arith.constant 0 : index
    %0 = memref.load %arg1[%c0] : memref<3xf32, #tpu.memory_space<smem>>
    %c0_0 = arith.constant 0 : index
    %c0_1 = arith.constant 0 : index
    %c0_2 = arith.constant 0 : index
    %1 = vector.load %arg2[%c0_0, %c0_1, %c0_2] : memref<3x16x16xf32, #tpu.memory_space<vmem>>, vector<1x16x16xf32>
    %2 = vector.shape_cast %1 : vector<1x16x16xf32> to vector<16x16xf32>
    %3 = vector.broadcast %0 : f32 to vector<16x16xf32>
    %4 = arith.mulf %3, %2 : vector<16x16xf32>
    %c1 = arith.constant 1 : index
    %5 = memref.load %arg1[%c1] : memref<3xf32, #tpu.memory_space<smem>>
    %c1_3 = arith.constant 1 : index
    %c0_4 = arith.constant 0 : index
    %c0_5 = arith.constant 0 : index
    %6 = vector.load %arg2[%c1_3, %c0_4, %c0_5] : memref<3x16x16xf32, #tpu.memory_space<vmem>>, vector<1x16x16xf32>
    %7 = vector.shape_cast %6 : vector<1x16x16xf32> to vector<16x16xf32>
    %8 = vector.broadcast %5 : f32 to vector<16x16xf32>
    %9 = arith.mulf %8, %7 : vector<16x16xf32>
    %10 = arith.addf %4, %9 : vector<16x16xf32>
    %c2 = arith.constant 2 : index
    %11 = memref.load %arg1[%c2] : memref<3xf32, #tpu.memory_space<smem>>
    %c2_6 = arith.constant 2 : index
    %c0_7 = arith.constant 0 : index
    %c0_8 = arith.constant 0 : index
    %12 = vector.load %arg2[%c2_6, %c0_7, %c0_8] : memref<3x16x16xf32, #tpu.memory_space<vmem>>, vector<1x16x16xf32>
    %13 = vector.shape_cast %12 : vector<1x16x16xf32> to vector<16x16xf32>
    %14 = vector.broadcast %11 : f32 to vector<16x16xf32>
    %15 = arith.mulf %14, %13 : vector<16x16xf32>
    %16 = arith.addf %10, %15 : vector<16x16xf32>
    %17 = arith.truncf %16 : vector<16x16xf32> to vector<16x16xbf16>
    %c0_9 = arith.constant 0 : index
    %c0_10 = arith.constant 0 : index
    %18 = vector.load %arg3[%c0_9, %c0_10] : memref<16x128xbf16, #tpu.memory_space<vmem>>, vector<16x128xbf16>
    %cst = arith.constant dense<0.000000e+00> : vector<16x128xf32>
    %19 = tpu.matmul %17, %18, %cst {dimension_numbers = #tpu.dot_dimension_numbers<[1], [0], [0], [1], [0, 0, 1, 1], [], []>} : vector<16x16xbf16>, vector<16x128xbf16>, vector<16x128xf32> -> vector<16x128xf32>
    %20 = vector.extract_strided_slice %19 {offsets = [0, 0], sizes = [8, 128], strides = [1, 1]} : vector<16x128xf32> to vector<8x128xf32>
    %c0_11 = arith.constant 0 : index
    %c0_12 = arith.constant 0 : index
    %21 = vector.load %arg4[%c0_11, %c0_12] : memref<8x128xf32, #tpu.memory_space<vmem>>, vector<8x128xf32>
    tpu.vector_store %arg4[%c0_11, %c0_12], %20 {strides = array<i32>} : memref<8x128xf32, #tpu.memory_space<vmem>>, vector<8x128xf32>,
    return
  }
  func.func @transform_0(%arg0: i32) -> i32 {
    %c0_i32 = arith.constant 0 : i32
    %c0_i32_0 = arith.constant 0 : i32
    return %c0_i32 : i32
  }
  func.func @transform_1(%arg0: i32) -> (i32, i32, i32) {
    %c0_i32 = arith.constant 0 : i32
    %c0_i32_0 = arith.constant 0 : i32
    %c0_i32_1 = arith.constant 0 : i32
    %c0_i32_2 = arith.constant 0 : i32
    return %c0_i32, %c0_i32_0, %c0_i32_1 : i32, i32, i32
  }
  func.func @transform_2(%arg0: i32) -> (i32, i32) {
    %c0_i32 = arith.constant 0 : i32
    %c0_i32_0 = arith.constant 0 : i32
    return %c0_i32, %arg0 : i32, i32
  }
  func.func @transform_3(%arg0: i32) -> (i32, i32) {
    %c0_i32 = arith.constant 0 : i32
    %c0_i32_0 = arith.constant 0 : i32
    return %c0_i32, %arg0 : i32, i32
  }
}

</mosaic_0001>

<bundles_post_ra>
// kernel: squeeze.15
= control target key start
LH: loop header
LB: loop body
LE: loop exit
PB: predicated region body
PF: predicated region fallthrough
CT: control target
= control target key end

     0   :  { %s85_s0 = inlined_call_operand.vmem [shape: f32[128], index: 0, kind: input, shape index: {}]   ;;  %s86_s1 = inlined_call_operand.hbm [shape: f32[2,64], index: 1, kind: output, shape index: {}]  }
   0x1   :  { %v5_v0 = vld [vmem:[%s85_s0] sm:$0x1] }
   0x2   :  { %2 = vsyncpa [#allocation1], 0  ;;  %6 = vst [vmem:[#allocation3] sm:$0x1] %v5_v0  ;;  %vm8_vm0 = vcmask 523264   ;;  %s58_s0 = smov 64  }
   0x3   :  { %s59_s8 = smov [#allocation0]  }
   0x4   :  { %s26_s9 = sshll.u32 %s59_s8, 4  ;;  %s27_s9 = int_to_ptr.vmem [resolvable:$true] %s26_s9 }
   0x5   :  { %s34_s10 = scalar_lea.vmem %s27_s9, 32  ;;  %p39_p1 = scmp.lt.s32.totalorder %s27_s9, %s27_s9 }
   0x6   :  { %p35_p0 = scmp.ne.s32.totalorder %s27_s9, %s34_s10  ;;  %p40_p2 = scmp.lt.s32.totalorder %s34_s10, %s34_s10 }
   0x8   :  { %p41_p3 = por %p40_p2, %p39_p1 }
   0x9   :  { %v10_v1 = vld [vmem:[#allocation3] sm:$0x1]  }
   0xa   :  { %v7_v2 = vld [vmem:[#allocation3] sm:$0x1]   ;;  %11 = vrot.lane.b32.xlu0 %v10_v1, %s58_s0  ;;  %p42_p4 = pnand %p41_p3, %p35_p0 }
   0xb   :  { %9 = vst.msk [vmem:[#allocation2] sm:$0x1] %vm8_vm0, %v7_v2  }
  0x7c   :  { %v12_v3 = vpop.permute.xlu0 %11  }
  0x7d   :  { %15 = vst.msk [vmem:[#allocation2 + $0x1] sm:$0x1] %vm8_vm0, %v12_v3  }
  0x84   :  { %v19_v4 = vld [vmem:[#allocation2] sm:$0x3] }
  0x85   :  { %21 = vst [vmem:[#allocation0] sm:$0x3] %v19_v4 }
  0x86   :  { %45 = shalt.err (!%p42_p4)
}
  0x87   :  { %s46_s13 = scalar_lea.hbm %s86_s1, 32 }
  0x88   :  { %p47_p5 = scmp.ne.s32.totalorder %s86_s1, %s46_s13  ;;  %p50_p6 = scmp.lt.u32.totalorder %s46_s13, %s86_s1 }
  0x8a   :  { %p52_p7 = pnand %p50_p6, %p47_p5 }
  0x8c   :  { %55 = shalt.err (!%p52_p7)
}
  0x8d   :  { %29 = dma.vmem_to_hbm [thread:$0]  %s27_s9, 32, %s86_s1, [#allocation1]  }
  0x8e   :  { %56 = dma.done.wait [#allocation1], 32  }
  0x8f   :  { %57 = vsyncadd [#allocation1], 4294967264 }
  0x90   :  { %31 = vsyncpa [#allocation1], 1 }

// kernel: _multi_scale_grid_fwd.1
= control target key start
LH: loop header
LB: loop body
LE: loop exit
PB: predicated region body
PF: predicated region fallthrough
CT: control target
= control target key end

     0   :  { %8 = vsyncpa [#allocation3], 0  ;;  %s195_s0 = inlined_call_operand.vmem [shape: f32[3], index: 0, kind: input, shape index: {}]   ;;  %s196_s1 = inlined_call_operand.vmem [shape: f32[3,16,16], index: 1, kind: input, shape index: {}]   ;;  %s197_s2 = inlined_call_operand.vmem [shape: bf16[16,128], index: 2, kind: input, shape index: {}]   ;;  %s198_s3 = inlined_call_operand.vmem [shape: f32[8,128], index: 3, kind: output, shape index: {}]  }
   0x1   :  { %s15_s14 = sshll.u32 %s195_s0, 4  ;;  %s16_s14 = int_to_ptr.vmem [resolvable:$true] %s15_s14 }
   0x2   :  { %s131_s15 = scalar_lea.vmem %s16_s14, 16  ;;  %p136_p1 = scmp.lt.s32.totalorder %s16_s14, %s16_s14 }
   0x3   :  { %p132_p0 = scmp.ne.s32.totalorder %s16_s14, %s131_s15  ;;  %p137_p2 = scmp.lt.s32.totalorder %s131_s15, %s131_s15 }
   0x5   :  { %p138_p3 = por %p137_p2, %p136_p1 }
   0x7   :  { %p139_p4 = pnand %p138_p3, %p132_p0 }
   0x9   :  { %142 = shalt.err (!%p139_p4)
}
   0xa   :  { %s145_s16 = smov [#allocation2]  }
   0xb   :  { %18 = dma.vmem_to_smem %s16_s14, 16, %s145_s16, [#allocation3]  }
   0xc   :  { %143 = dma.done.wait [#allocation3], 16  }
   0xd   :  { %144 = vsyncadd [#allocation3], 4294967280 }
   0xe   :  { %26 = sfence }
   0xf   :  { %v130_v0 = vld [vmem:[%s197_s2] sm:$0xff]   ;;  %v146_v1 = vmov 0.0   ;;  %s28_s0 = sld [smem:[#allocation2]]  ;;  %vm147_vm0 = vmmov 0   ;;  %s111_s19 = sld [smem:[#allocation2 + $0x1]]  ;;  %v30_v3 = vld [vmem:[%s196_s1 + $0x8] sm:$0xff] }
  0x10   :  { %121 = vmatprep.subr.bf16.mxu0 %v146_v1  ;;  %123 = vmatprep.mubr.msk.bf16.mxu0 %vm147_vm0, %v146_v1  ;;  %s114_s20 = sld [smem:[#allocation2 + $0x2]]  ;;  %v29_v2 = vld [vmem:[%s196_s1] sm:$0xff]  ;;  %v112_v4 = vld [vmem:[%s196_s1 + $0x10] sm:$0xff]  ;;  %v113_v5 = vld [vmem:[%s196_s1 + $0x18] sm:$0xff]  ;;  %vm61_vm1 = vcmask 130048  }
  0x11   :  { %122 = vmatpush3.bf16.msra.mxu0 %v130_v0  ;;  %v115_v6 = vld [vmem:[%s196_s1 + $0x20] sm:$0xff]  ;;  %v116_v7 = vld [vmem:[%s196_s1 + $0x28] sm:$0xff] }
  0x15   :  { %v31_v8 = vstv %s28_s0  ;;  %v38_v11 = vstv %s111_s19 }
  0x16   :  { %v32_v9 = vmul.f32 %v31_v8, %v29_v2  ;;  %v33_v10 = vmul.f32 %v31_v8, %v30_v3  ;;  %v47_v12 = vstv %s114_s20  ;;  %v39_v13 = vmul.f32 %v112_v4, %v38_v11 }
  0x17   :  { %v40_v14 = vmul.f32 %v113_v5, %v38_v11  ;;  %v48_v15 = vmul.f32 %v115_v6, %v47_v12  ;;  %v49_v16 = vmul.f32 %v116_v7, %v47_v12 }
  0x18   :  { %v41_v17 = vadd.f32 %v39_v13, %v32_v9 }
  0x19   :  { %v42_v18 = vadd.f32 %v40_v14, %v33_v10 }
  0x1a   :  { %v50_v19 = vadd.f32 %v48_v15, %v41_v17 }
  0x1b   :  { %v51_v20 = vadd.f32 %v49_v16, %v42_v18 }
  0x1d   :  { %v52_v21 = vpack.c.bf16 %v51_v20, %v50_v19 }
  0x1f   :  { %124 = vmatmul.mubr.msk.bf16.vlgmr.msra.gmra.mrb[0].mxu0 %vm61_vm1, %v52_v21 }
  0xf2   :  { %v99_v22 = vpop.f32.mrb[0].mxu0 }
  0xf3   :  { %105 = vst [vmem:[%s198_s3] sm:$0xff] %v99_v22  ;;  %v125_v23 = vpop.f32.mrb[1].mxu0 }
  0xf4   :  { %v102_v24 = vpop.f32.mrb[2].mxu0 }
  0xf5   :  { %v126_v25 = vpop.f32.mrb[3].mxu0 }
  0xf6   :  { %110 = vsyncpa [#allocation3], 1 }

</bundles_post_ra>
